<compile_context>
chip_gen: v7x
topology: tpu7x:2x2x1
jax: 0.10.0
libtpu: 0.0.40
codegen_flags: <defaults>
</compile_context>

<pallas_src>
import functools

import jax
import jax.numpy as jnp
from jax.experimental import pallas as pl
from jax.experimental.pallas import tpu as pltpu


# ----------------------------------------------------------------------------
# Kernels
# ----------------------------------------------------------------------------
def _adain_fused_kernel(x_ref, gb_ref, o_ref, *, inv_n, eps):
    """One grid step == one row tile with the full spatial extent resident.

    x_ref  : (TR, HW)  activations (f32 or bf16)
    gb_ref : (TR, 2)   packed [gamma, beta] per row (f32)
    o_ref  : (TR, HW)  output
    """
    # NOTE: for bf16 inputs the f32 upcast and the centered copy below
    # materialize full-tile VMEM temporaries; this is accounted for in the 6x
    # tile-budget factor chosen in the wrapper.
    x = x_ref[...].astype(jnp.float32)                    # (TR, HW)
    gb = gb_ref[...]                                      # (TR, 2) f32
    gamma = gb[:, 0:1]
    beta = gb[:, 1:2]

    mean = jnp.sum(x, axis=-1, keepdims=True) * inv_n     # (TR, 1)
    xc = x - mean                                         # reused: var + output
    var = jnp.sum(xc * xc, axis=-1, keepdims=True) * inv_n
    scale = gamma * jax.lax.rsqrt(var + eps)              # (TR, 1)

    o_ref[...] = (xc * scale + beta).astype(o_ref.dtype)


def _stats_kernel(x_ref, s_ref, *, hw, thw):
    """Accumulate per-row sum / sum-of-squares across HW chunks.

    Output block index is constant along the h axis -> VMEM-resident
    accumulator (init at h == 0, write back when the row tile changes).
    """
    h = pl.program_id(1)

    @pl.when(h == 0)
    def _():
        s_ref[...] = jnp.zeros_like(s_ref)

    x = x_ref[...].astype(jnp.float32)                    # (TR, THW)
    if hw % thw != 0:
        # Last HW chunk extends past the array; mask the out-of-bounds lanes
        # so they contribute exactly 0 to both sums.
        col = h * thw + jax.lax.broadcasted_iota(jnp.int32, x.shape, 1)
        x = jnp.where(col < hw, x, 0.0)

    s1 = jnp.sum(x, axis=-1, keepdims=True)
    s2 = jnp.sum(x * x, axis=-1, keepdims=True)
    s_ref[...] += jnp.concatenate([s1, s2], axis=-1)       # (TR, 2)


def _scale_shift_kernel(x_ref, ss_ref, o_ref):
    """out = x * scale + shift  (scale/shift precomputed per row)."""
    x = x_ref[...].astype(jnp.float32)                    # (TR, THW)
    ss = ss_ref[...]                                      # (TR, 2) f32
    o_ref[...] = (x * ss[:, 0:1] + ss[:, 1:2]).astype(o_ref.dtype)
    # OOB columns of the last HW chunk are computed but dropped on writeback.


# ----------------------------------------------------------------------------
# Tiling / VMEM policy
# ----------------------------------------------------------------------------
def _vmem_budget():
    """Return (vmem_limit_bytes, per-tile f32-byte budget), generation-aware.

    Total kernel footprint ~= 6x the f32-equivalent tile:
      2x double-buffered input + 2x double-buffered output
      + f32 upcast / centered-x temporaries for bf16 inputs.
    v5e/v6e have 128 MiB physical VMEM, v7x has 64 MiB per TensorCore, so the
    limit is derived from the hardware rather than hard-coded.
    """
    try:
        cap = int(pltpu.get_tpu_info().vmem_capacity_bytes)
    except Exception:
        cap = 64 << 20                      # conservative: v7x per-TC VMEM
    vmem_limit = min(cap * 3 // 4, 96 << 20)   # explicit; above default scoped limits
    tile_budget = min(vmem_limit // 6, 6 << 20)
    return int(vmem_limit), int(tile_budget)


def _pick_row_tile(bc, row_bytes_f32, budget_bytes):
    """Largest row tile (multiple-of-8 divisor of bc, or bc itself) whose
    full-HW f32 tile fits the budget. Prefers >= 2 grid steps so both v7x
    TensorCores get work. Returns None if no full-HW tile fits (two-pass path).
    """
    if bc % 8 != 0:
        # Sublane rule: block dim must be a multiple of 8 or the full dim.
        return bc if bc * row_bytes_f32 <= budget_bytes else None
    divisors = [d for d in range(8, bc + 1, 8) if bc % d == 0]
    fitting = [d for d in divisors if d * row_bytes_f32 <= budget_bytes]
    if not fitting:
        return None
    multi = [d for d in fitting if bc // d >= 2]
    return max(multi) if multi else max(fitting)


# ----------------------------------------------------------------------------
# Wrapper
# ----------------------------------------------------------------------------
def adaptive_instance_norm(x, style, weight, bias, *, eps=1e-5,
                           tile_budget_bytes=None, vmem_limit_bytes=None):
    """x: (B, C, H, W) NCHW; style: (B, S); weight: (2C, S); bias: (2C,)."""
    B, C, H, W = x.shape
    HW = H * W
    BC = B * C

    # --- style projection hoisted to one small batched XLA matmul -----------
    style2d = style.reshape(style.shape[0], -1)            # mirrors .squeeze()
    proj = (style2d.astype(jnp.float32) @ weight.astype(jnp.float32).T
            + bias.astype(jnp.float32))                    # (B, 2C) f32
    gamma = proj[:, :C].reshape(BC)                        # (BC,)
    beta = proj[:, C:].reshape(BC)                         # (BC,)

    # --- (B, C) collapsed; no padding, no trailing slice ----------------------
    x_flat = x.reshape(BC, HW)                             # free reshape

    vmem_limit, tile_budget = _vmem_budget()
    if vmem_limit_bytes is not None:
        vmem_limit = int(vmem_limit_bytes)
    if tile_budget_bytes is not None:
        tile_budget = int(tile_budget_bytes)

    TR = _pick_row_tile(BC, HW * 4, tile_budget)

    if TR is not None:
        # ---- fused single-pass path: full HW row resident per tile ----------
        gb = jnp.stack([gamma, beta], axis=-1)             # (BC, 2) f32
        out_flat = pl.pallas_call(
            functools.partial(_adain_fused_kernel, inv_n=1.0 / HW, eps=eps),
            grid=(BC // TR,),
            in_specs=[
                pl.BlockSpec((TR, HW), lambda r: (r, 0)),  # activations
                pl.BlockSpec((TR, 2), lambda r: (r, 0)),   # packed gamma/beta
            ],
            out_specs=pl.BlockSpec((TR, HW), lambda r: (r, 0)),
            out_shape=jax.ShapeDtypeStruct((BC, HW), x.dtype),
            compiler_params=pltpu.CompilerParams(
                dimension_semantics=("parallel",),
                vmem_limit_bytes=vmem_limit),
        )(x_flat, gb)
    else:
        # ---- two-pass path for very large HW: stats accumulate, then scale --
        if BC % 8 == 0:
            cands = [d for d in range(8, BC + 1, 8)
                     if BC % d == 0 and d * 128 * 4 <= tile_budget]
            if cands:
                multi = [d for d in cands if BC // d >= 2]
                TR2 = max(multi) if multi else max(cands)
            else:
                TR2 = 8
        else:
            TR2 = BC
        THW = max(128, (tile_budget // (TR2 * 4)) // 128 * 128)
        n_rt = BC // TR2
        n_ht = -(-HW // THW)

        stats = pl.pallas_call(
            functools.partial(_stats_kernel, hw=HW, thw=THW),
            grid=(n_rt, n_ht),
            in_specs=[pl.BlockSpec((TR2, THW), lambda r, h: (r, h))],
            out_specs=pl.BlockSpec((TR2, 2), lambda r, h: (r, 0)),
            out_shape=jax.ShapeDtypeStruct((BC, 2), jnp.float32),
            compiler_params=pltpu.CompilerParams(
                dimension_semantics=("parallel", "arbitrary"),
                vmem_limit_bytes=vmem_limit),
        )(x_flat)

        # Tiny (BC,)-sized epilogue math in XLA.
        # TODO(synk): chunked stats use E[x^2]-mean^2 (cancellation-prone for
        # large DC offsets); the fused path above uses the two-pass variance.
        mean = stats[:, 0] * (1.0 / HW)
        var = jnp.maximum(stats[:, 1] * (1.0 / HW) - mean * mean, 0.0)
        inv_std = jax.lax.rsqrt(var + eps)
        scale = gamma * inv_std
        shift = beta - mean * scale
        ss = jnp.stack([scale, shift], axis=-1)             # (BC, 2) f32

        out_flat = pl.pallas_call(
            _scale_shift_kernel,
            grid=(n_rt, n_ht),
            in_specs=[
                pl.BlockSpec((TR2, THW), lambda r, h: (r, h)),
                pl.BlockSpec((TR2, 2), lambda r, h: (r, 0)),
            ],
            out_specs=pl.BlockSpec((TR2, THW), lambda r, h: (r, h)),
            out_shape=jax.ShapeDtypeStruct((BC, HW), x.dtype),
            compiler_params=pltpu.CompilerParams(
                dimension_semantics=("parallel", "parallel"),
                vmem_limit_bytes=vmem_limit),
        )(x_flat, ss)

    return out_flat.reshape(B, C, H, W)


# ----------------------------------------------------------------------------
# Reference & self-test
# ----------------------------------------------------------------------------
def _reference(x, style, weight, bias, eps=1e-5):
    """Plain-JAX f32 reference matching the PyTorch module."""
    x = x.astype(jnp.float32)
    B, C, H, W = x.shape
    mean = x.mean(axis=(2, 3), keepdims=True)
    var = ((x - mean) ** 2).mean(axis=(2, 3), keepdims=True)
    normed = (x - mean) / jnp.sqrt(var + eps)
    proj = style.astype(jnp.float32) @ weight.astype(jnp.float32).T + bias
    gamma = proj[:, :C].reshape(B, C, 1, 1)
    beta = proj[:, C:].reshape(B, C, 1, 1)
    return gamma * normed + beta


if __name__ == "__main__":
    B, C, H, W = 2, 4, 16, 16
    STYLE_DIM = 8

    key = jax.random.PRNGKey(0)
    kx, ks, kw, kx2, kx3 = jax.random.split(key, 5)

    x = jax.random.normal(kx, (B, C, H, W), dtype=jnp.float32)
    style = jax.random.normal(ks, (B, STYLE_DIM), dtype=jnp.float32)

    # Deterministic parameter init mirroring nn.Linear(style_dim, 2*C):
    # uniform(-1/sqrt(style_dim), 1/sqrt(style_dim)) weights, bias[:C]=1, bias[C:]=0.
    bound = 1.0 / jnp.sqrt(jnp.float32(STYLE_DIM))
    weight = jax.random.uniform(
        kw, (2 * C, STYLE_DIM), dtype=jnp.float32, minval=-bound, maxval=bound)
    bias = jnp.concatenate(
        [jnp.ones((C,), jnp.float32), jnp.zeros((C,), jnp.float32)])

    # --- fused path, 128-multiple spatial ------------------------------------
    out = jax.block_until_ready(adaptive_instance_norm(x, style, weight, bias))
    ref = _reference(x, style, weight, bias)
    assert out.shape == (B, C, H, W)
    assert jnp.allclose(out, ref, atol=1e-5, rtol=1e-5), "mismatch (f32 fused)"

    # --- fused path, non-128-multiple spatial (full-dim block, no pad/slice) --
    x2 = jax.random.normal(kx2, (B, C, 10, 10), dtype=jnp.float32)
    out2 = jax.block_until_ready(adaptive_instance_norm(x2, style, weight, bias))
    ref2 = _reference(x2, style, weight, bias)
    assert jnp.allclose(out2, ref2, atol=1e-5, rtol=1e-5), "mismatch (f32 unaligned)"

    # --- bf16 activations (stats computed in f32 inside the kernel) ----------
    x_bf16 = x.astype(jnp.bfloat16)
    out_bf = jax.block_until_ready(
        adaptive_instance_norm(x_bf16, style, weight, bias))
    ref_bf = _reference(x_bf16, style, weight, bias)
    assert out_bf.dtype == jnp.bfloat16
    assert jnp.allclose(out_bf.astype(jnp.float32), ref_bf, atol=5e-2, rtol=5e-2), \
        "mismatch (bf16)"

    # --- forced two-pass (large-HW) path: tiny tile budget, HW % 128 != 0 ----
    x3 = jax.random.normal(kx3, (B, C, 20, 20), dtype=jnp.float32)
    out3 = jax.block_until_ready(
        adaptive_instance_norm(x3, style, weight, bias,
                               tile_budget_bytes=8 * 128 * 4))
    ref3 = _reference(x3, style, weight, bias)
    assert jnp.allclose(out3, ref3, atol=1e-5, rtol=1e-5), "mismatch (two-pass)"

    print("KERNEL_OK")
</pallas_src>

<mosaic_0001>
module attributes {stable_mosaic.version = 11 : i64} {
  func.func @_adain_fused_kernel(%arg0: i32, %arg1: memref<8x256xf32, #tpu.memory_space<vmem>>, %arg2: memref<8x2xf32, #tpu.memory_space<vmem>>, %arg3: memref<8x256xf32, #tpu.memory_space<vmem>>) attributes {dimension_semantics = [#tpu.dimension_semantics<parallel>], iteration_bounds = array<i64: 1>, scalar_prefetch = 0 : i64, scratch_operands = 0 : i64, tpu.core_type = #tpu.core_type<tc>, window_params = [{transform_indices = @transform_0, window_bounds = array<i64: 8, 256>}, {transform_indices = @transform_1, window_bounds = array<i64: 8, 2>}, {transform_indices = @transform_2, window_bounds = array<i64: 8, 256>}]} {
    %c0 = arith.constant 0 : index
    %c0_0 = arith.constant 0 : index
    %0 = vector.load %arg1[%c0, %c0_0] : memref<8x256xf32, #tpu.memory_space<vmem>>, vector<8x256xf32>
    %c0_1 = arith.constant 0 : index
    %c0_2 = arith.constant 0 : index
    %1 = vector.load %arg2[%c0_1, %c0_2] : memref<8x2xf32, #tpu.memory_space<vmem>>, vector<8x2xf32>
    %2 = vector.extract_strided_slice %1 {offsets = [0, 0], sizes = [8, 1], strides = [1, 1]} : vector<8x2xf32> to vector<8x1xf32>
    %3 = vector.extract_strided_slice %1 {offsets = [0, 1], sizes = [8, 1], strides = [1, 1]} : vector<8x2xf32> to vector<8x1xf32>
    %cst = arith.constant dense<0.000000e+00> : vector<8xf32>
    %4 = vector.multi_reduction <add>, %0, %cst [1] : vector<8x256xf32> to vector<8xf32>
    %5 = vector.shape_cast %4 : vector<8xf32> to vector<8x1xf32>
    %cst_3 = arith.constant 3.906250e-03 : f32
    %6 = vector.broadcast %cst_3 : f32 to vector<8x1xf32>
    %7 = arith.mulf %5, %6 : vector<8x1xf32>
    %8 = vector.broadcast %7 : vector<8x1xf32> to vector<8x256xf32>
    %9 = arith.subf %0, %8 : vector<8x256xf32>
    %10 = arith.mulf %9, %9 : vector<8x256xf32>
    %cst_4 = arith.constant dense<0.000000e+00> : vector<8xf32>
    %11 = vector.multi_reduction <add>, %10, %cst_4 [1] : vector<8x256xf32> to vector<8xf32>
    %12 = vector.shape_cast %11 : vector<8xf32> to vector<8x1xf32>
    %cst_5 = arith.constant 3.906250e-03 : f32
    %13 = vector.broadcast %cst_5 : f32 to vector<8x1xf32>
    %14 = arith.mulf %12, %13 : vector<8x1xf32>
    %cst_6 = arith.constant 9.99999974E-6 : f32
    %15 = vector.broadcast %cst_6 : f32 to vector<8x1xf32>
    %16 = arith.addf %14, %15 : vector<8x1xf32>
    %17 = math.rsqrt %16 : vector<8x1xf32>
    %18 = arith.mulf %2, %17 : vector<8x1xf32>
    %19 = vector.broadcast %18 : vector<8x1xf32> to vector<8x256xf32>
    %20 = arith.mulf %9, %19 : vector<8x256xf32>
    %21 = vector.broadcast %3 : vector<8x1xf32> to vector<8x256xf32>
    %22 = arith.addf %20, %21 : vector<8x256xf32>
    %c0_7 = arith.constant 0 : index
    %c0_8 = arith.constant 0 : index
    %23 = vector.load %arg3[%c0_7, %c0_8] : memref<8x256xf32, #tpu.memory_space<vmem>>, vector<8x256xf32>
    tpu.vector_store %arg3[%c0_7, %c0_8], %22 {strides = array<i32>} : memref<8x256xf32, #tpu.memory_space<vmem>>, vector<8x256xf32>,
    return
  }
  func.func @transform_0(%arg0: i32) -> (i32, i32) {
    %c0_i32 = arith.constant 0 : i32
    %c0_i32_0 = arith.constant 0 : i32
    return %arg0, %c0_i32 : i32, i32
  }
  func.func @transform_1(%arg0: i32) -> (i32, i32) {
    %c0_i32 = arith.constant 0 : i32
    %c0_i32_0 = arith.constant 0 : i32
    return %arg0, %c0_i32 : i32, i32
  }
  func.func @transform_2(%arg0: i32) -> (i32, i32) {
    %c0_i32 = arith.constant 0 : i32
    %c0_i32_0 = arith.constant 0 : i32
    return %arg0, %c0_i32 : i32, i32
  }
}

</mosaic_0001>

<bundles_post_ra>
// kernel: tpu_custom_call.1
= control target key start
LH: loop header
LB: loop body
LE: loop exit
PB: predicated region body
PF: predicated region fallthrough
CT: control target
= control target key end

     0   :  { %7 = vsyncpa [#allocation3], 0  ;;  %s176_s0 = inlined_call_operand.hbm [shape: f32[8,256], index: 0, kind: input, shape index: {}]   ;;  %s177_s1 = inlined_call_operand.vmem [shape: f32[8,2], index: 1, kind: input, shape index: {}]   ;;  %s178_s2 = inlined_call_operand.hbm [shape: f32[8,256], index: 2, kind: output, shape index: {}]  }
   0x1   :  { %8 = vsyncpa [#allocation4], 0  ;;  %s130_s9 = smov [#allocation2]   ;;  %s82_s13 = scalar_lea.hbm %s176_s0, 256 }
   0x2   :  { %s15_s10 = sshll.u32 %s130_s9, 4  ;;  %p83_p0 = scmp.ne.s32.totalorder %s176_s0, %s82_s13  ;;  %s16_s10 = int_to_ptr.vmem [resolvable:$true] %s15_s10 }
   0x3   :  { %p86_p1 = scmp.lt.u32.totalorder %s82_s13, %s176_s0 }
   0x5   :  { %p88_p2 = pnand %p86_p1, %p83_p0 }
   0x7   :  { %91 = shalt.err (!%p88_p2)
}
   0x8   :  { %s92_s18 = scalar_lea.vmem %s16_s10, 256  ;;  %p97_p4 = scmp.lt.s32.totalorder %s16_s10, %s16_s10 }
   0x9   :  { %p93_p3 = scmp.ne.s32.totalorder %s16_s10, %s92_s18  ;;  %p98_p5 = scmp.lt.s32.totalorder %s92_s18, %s92_s18 }
   0xb   :  { %p99_p6 = por %p98_p5, %p97_p4 }
   0xd   :  { %p100_p7 = pnand %p99_p6, %p93_p3 }
   0xf   :  { %103 = shalt.err (!%p100_p7)
}
  0x10   :  { %18 = dma.hbm_to_vmem [thread:$0]  %s176_s0, 256, %s16_s10, [#allocation3]  }
  0x11   :  { %126 = dma.done.wait [#allocation3], 256  }
  0x12   :  { %127 = vsyncadd [#allocation3], 4294967040  ;;  %v24_v0 = vld [vmem:[#allocation2] sm:$0xff]  ;;  %v25_v1 = vld [vmem:[#allocation2 + $0x8] sm:$0xff]  ;;  %v131_v10 = vmov 0   ;;  %v132_v11 = vmov 1  }
  0x13   :  { %v27_v2 = vadd.f32 %v25_v1, %v24_v0  ;;  %77 = vset.pattern.permute.xlu1 %v131_v10  ;;  %79 = vset.pattern.permute.xlu0 %v132_v11  ;;  %v26_v15 = vld [vmem:[%s177_s1] sm:$0xff]  ;;  %s133_s22 = smov [#allocation5]  }
  0x14   :  { %s64_s23 = sshll.u32 %s133_s22, 4  ;;  %s65_s23 = int_to_ptr.vmem [resolvable:$true] %s64_s23 }
  0x15   :  { %28 = vadd.xlane.f32.xlu0 %v27_v2  ;;  %s104_s24 = scalar_lea.vmem %s65_s23, 256  ;;  %p109_p9 = scmp.lt.s32.totalorder %s65_s23, %s65_s23 }
  0x16   :  { %p105_p8 = scmp.ne.s32.totalorder %s65_s23, %s104_s24  ;;  %p110_p10 = scmp.lt.s32.totalorder %s104_s24, %s104_s24 }
  0x18   :  { %p111_p11 = por %p110_p10, %p109_p9 }
  0x1a   :  { %p112_p12 = pnand %p111_p11, %p105_p8 }
  0xa2   :  { %v29_v3 = vpop.xlane.xlu0 %28 }
  0xa3   :  { %v30_v4 = vmul.f32 0.00390625, %v29_v3 }
  0xa5   :  { %v31_v5 = vsub.f32 %v24_v0, %v30_v4  ;;  %v32_v6 = vsub.f32 %v25_v1, %v30_v4 }
  0xa7   :  { %v33_v7 = vmul.f32 %v31_v5, %v31_v5  ;;  %v34_v8 = vmul.f32 %v32_v6, %v32_v6 }
  0xa9   :  { %v35_v9 = vadd.f32 %v34_v8, %v33_v7 }
  0xab   :  { %36 = vadd.xlane.f32.xlu0 %v35_v9 }
 0x138   :  { %v37_v12 = vpop.xlane.xlu0 %36 }
 0x139   :  { %v38_v13 = vmul.f32 0.00390625, %v37_v12 }
 0x13b   :  { %v39_v14 = vadd.f32 1e-05, %v38_v13 }
 0x13d   :  { %80 = vrsqrt.f32 %v39_v14 }
 0x147   :  { %v81_v16 = vpop.eup %80 }
 0x148   :  { %v41_v17 = vmul.f32 %v81_v16, %v26_v15 }
 0x14a   :  { %44 = vperm.xlu1 %77, %v41_v17  }
 0x14e   :  { %78 = vset.pattern.permute.xlu1 %v132_v11 }
 0x14f   :  { %51 = vperm.xlu1 %78, %v26_v15  }
 0x1c9   :  { %v45_v18 = vpop.permute.xlu1 %44 }
 0x1ca   :  { %v47_v19 = vmul.f32 %v45_v18, %v31_v5  ;;  %v48_v20 = vmul.f32 %v45_v18, %v32_v6 }
 0x1ce   :  { %v52_v21 = vpop.permute.xlu1 %51 }
 0x1cf   :  { %v54_v22 = vadd.f32 %v52_v21, %v47_v19  ;;  %v55_v23 = vadd.f32 %v52_v21, %v48_v20 }
 0x1d1   :  { %56 = vst [vmem:[#allocation5] sm:$0xff] %v54_v22  ;;  %57 = vst [vmem:[#allocation5 + $0x8] sm:$0xff] %v55_v23 }
 0x1d2   :  { %115 = shalt.err (!%p112_p12)
}
 0x1d3   :  { %s116_s26 = scalar_lea.hbm %s178_s2, 256 }
 0x1d4   :  { %p117_p13 = scmp.ne.s32.totalorder %s178_s2, %s116_s26  ;;  %p120_p0 = scmp.lt.u32.totalorder %s116_s26, %s178_s2 }
 0x1d6   :  { %p122_p1 = pnand %p120_p0, %p117_p13 }
 0x1d8   :  { %125 = shalt.err (!%p122_p1)
}
 0x1d9   :  { %67 = dma.vmem_to_hbm [thread:$0]  %s65_s23, 256, %s178_s2, [#allocation4]  }
 0x1da   :  { %128 = dma.done.wait [#allocation4], 256  }
 0x1db   :  { %129 = vsyncadd [#allocation4], 4294967040 }
 0x1dc   :  { %71 = vsyncpa [#allocation3], 1 }
 0x1dd   :  { %72 = vsyncpa [#allocation4], 1 }

</bundles_post_ra>
